<compile_context>
chip_gen: v7x
topology: tpu7x:2x2x1
jax: 0.10.0
libtpu: 0.0.40
codegen_flags: <defaults>
</compile_context>

<pallas_src>
import functools

import jax
import jax.numpy as jnp
from jax.experimental import pallas as pl
from jax.experimental.pallas import tpu as pltpu


def _gram_kernel(x1_ref, x2_ref, g1_ref, g2_ref, *,
                 tpc, t1, t2, d1, d2, td1, td2, mask1, mask2):
    """Accumulate raw (B,B) Gram matrices over D-tiles.

    x1_ref/x2_ref: (B, td_i) tiles in VMEM (original dtype, bf16 or f32).
    g1_ref/g2_ref: (B, B) f32 output blocks, resident across the t axis
                   (per core-split accumulators).
    """
    c = pl.program_id(0)          # core-split index ("parallel")
    t = pl.program_id(1)          # D-tile index within this split ("arbitrary")
    g = c * tpc + t               # global D-tile index

    @pl.when(t == 0)
    def _init():
        g1_ref[...] = jnp.zeros_like(g1_ref)
        g2_ref[...] = jnp.zeros_like(g2_ref)

    def _accum(x_ref, g_ref, n_tiles, d, td, needs_mask):
        def body():
            x = x_ref[...]
            if needs_mask:
                # Ragged last tile: zero the invalid lanes (Pallas does not
                # guarantee zeros in out-of-bounds lanes of a partial block).
                lane = jax.lax.broadcasted_iota(jnp.int32, x.shape, 1)
                width = d - g * td            # >= td for non-last tiles
                x = jnp.where(lane < width, x, jnp.zeros_like(x))
            # Contraction over D (lanes) -> good MXU depth; f32 accumulation.
            g_ref[...] += jax.lax.dot_general(
                x, x,
                dimension_numbers=(((1,), (1,)), ((), ())),
                preferred_element_type=jnp.float32,
            )
        # Skip steps past this input's last tile (shorter input / uneven split).
        pl.when(g < n_tiles)(body)

    _accum(x1_ref, g1_ref, t1, d1, td1, mask1)
    _accum(x2_ref, g2_ref, t2, d2, td2, mask2)


def _pick_tile(d, b, itemsize, target_bytes):
    """Per-input D-tile: ~target_bytes per block, 128-lane aligned.

    Returns (tile_d, n_tiles, needs_mask).  If the whole feature dim fits in
    one block we use the full-dim exception (tile == d) -> no masking needed.
    """
    cap = max(128, (int(target_bytes) // (b * itemsize)) // 128 * 128)
    if d <= cap:
        return d, 1, False
    n = pl.cdiv(d, cap)
    return cap, n, (d % cap) != 0


def _clamped_index_map(tpc, n_tiles):
    # Clamp so the shorter input / uneven core split never fetches out of
    # bounds; the revisited block is skipped via pl.when (no redundant DMA
    # for consecutive revisits).
    if n_tiles == 1:
        return lambda c, t: (0, 0)
    return lambda c, t: (0, jnp.minimum(c * tpc + t, n_tiles - 1))


def diff_loss(input1, input2, *, target_block_bytes=4 << 20, num_core_splits=2):
    """Pallas implementation of DiffLoss.forward. Returns a scalar f32."""
    b = input1.shape[0]
    assert input2.shape[0] == b

    # Flatten row-major (matches torch .view(B, -1) on contiguous NCHW).
    # Keep bf16/f32 as-is: no wrapper cast pass, halves HBM bytes for bf16.
    def _prep(x):
        x = x.reshape(b, -1)
        if x.dtype not in (jnp.float32, jnp.bfloat16):
            x = x.astype(jnp.float32)
        return x

    x1, x2 = _prep(input1), _prep(input2)
    d1, d2 = x1.shape[1], x2.shape[1]

    td1, t1, mask1 = _pick_tile(d1, b, x1.dtype.itemsize, target_block_bytes)
    td2, t2, mask2 = _pick_tile(d2, b, x2.dtype.itemsize, target_block_bytes)

    nt = max(t1, t2)
    nc = max(1, min(num_core_splits, nt))   # core splits (v7x: 2 TCs)
    tpc = pl.cdiv(nt, nc)                   # D-tiles per core split

    kernel = functools.partial(
        _gram_kernel, tpc=tpc, t1=t1, t2=t2, d1=d1, d2=d2,
        td1=td1, td2=td2, mask1=mask1, mask2=mask2)

    cost = pl.CostEstimate(
        flops=2 * b * b * (d1 + d2),
        transcendentals=0,
        bytes_accessed=b * (d1 * x1.dtype.itemsize + d2 * x2.dtype.itemsize)
        + 2 * nc * b * b * 4,
    )

    g1_parts, g2_parts = pl.pallas_call(
        kernel,
        out_shape=(
            jax.ShapeDtypeStruct((nc, b, b), jnp.float32),
            jax.ShapeDtypeStruct((nc, b, b), jnp.float32),
        ),
        grid=(nc, tpc),
        in_specs=[
            pl.BlockSpec((b, td1), _clamped_index_map(tpc, t1)),
            pl.BlockSpec((b, td2), _clamped_index_map(tpc, t2)),
        ],
        out_specs=[
            pl.BlockSpec((None, b, b), lambda c, t: (c, 0, 0)),
            pl.BlockSpec((None, b, b), lambda c, t: (c, 0, 0)),
        ],
        compiler_params=pltpu.CompilerParams(
            dimension_semantics=("parallel", "arbitrary"),
            vmem_limit_bytes=32 << 20,   # safe on all gens (v7x: 64 MiB phys)
        ),
        cost_estimate=cost,
    )(x1, x2)

    # --- tiny plain-JAX epilogue on (B,B) arrays (negligible cost) ---------
    g1 = jnp.sum(g1_parts, axis=0)
    g2 = jnp.sum(g2_parts, axis=0)

    def _center(g):  # Gc = (I - 11^T/B) G (I - 11^T/B)
        rm = jnp.mean(g, axis=1, keepdims=True)
        cm = jnp.mean(g, axis=0, keepdims=True)
        tm = jnp.mean(g)
        return g - rm - cm + tm

    gc1 = _center(g1)
    gc2 = _center(g2)
    n1 = jnp.sqrt(jnp.maximum(jnp.diagonal(gc1), 0.0))   # ||xc1_i||_2
    n2 = jnp.sqrt(jnp.maximum(jnp.diagonal(gc2), 0.0))
    s = (n1 + 1e-6) * (n2 + 1e-6)                         # (B,)
    scale = s[:, None] * s[None, :]
    return jnp.sum(gc1 * gc2 / scale) / float(d1 * d2)


def diff_loss_ref(input1, input2):
    """Plain-JAX reference mirroring the PyTorch code 1:1."""
    b = input1.shape[0]
    x1 = input1.reshape(b, -1).astype(jnp.float32)
    x2 = input2.reshape(b, -1).astype(jnp.float32)
    x1 = x1 - jnp.mean(x1, axis=0, keepdims=True)
    x2 = x2 - jnp.mean(x2, axis=0, keepdims=True)
    x1 = x1 / (jnp.linalg.norm(x1, axis=1, keepdims=True) + 1e-6)
    x2 = x2 / (jnp.linalg.norm(x2, axis=1, keepdims=True) + 1e-6)
    m = x1.T @ x2
    return jnp.mean(m ** 2)


if __name__ == "__main__":
    # DiffLoss has no learnable parameters; only inputs are needed.
    key = jax.random.PRNGKey(0)
    k1, k2, k3, k4 = jax.random.split(key, 4)

    # Case 1: default tiles — D1=1024, D2=512, both fit one full-dim block.
    a1 = jax.random.normal(k1, (8, 4, 16, 16), dtype=jnp.float32)
    a2 = jax.random.normal(k2, (8, 2, 16, 16), dtype=jnp.float32)
    # Case 2: tiny forced blocks — exercises multi-tile accumulation, the
    # 2-way core split, clamped index maps and ragged-last-tile masking
    # (D1=300, D2=245, tile=128).
    b1 = jax.random.normal(k3, (8, 3, 10, 10), dtype=jnp.float32)
    b2 = jax.random.normal(k4, (8, 5, 7, 7), dtype=jnp.float32)

    cases = [
        (a1, a2, {}, 1e-3),
        (b1, b2, dict(target_block_bytes=8 * 128 * 4), 1e-3),
        # Case 3: bf16 inputs stream as bf16 through the kernel.
        (a1.astype(jnp.bfloat16), a2.astype(jnp.bfloat16), {}, 5e-3),
    ]

    for i, (u, v, kwargs, rtol) in enumerate(cases):
        loss = jax.block_until_ready(diff_loss(u, v, **kwargs))
        ref = jax.block_until_ready(diff_loss_ref(u, v))
        assert loss.shape == (), f"case {i}: expected scalar, got {loss.shape}"
        assert jnp.allclose(loss, ref, rtol=rtol, atol=1e-7), (i, loss, ref)

    print("KERNEL_OK")
</pallas_src>

<mosaic_0001>
module attributes {stable_mosaic.version = 11 : i64} {
  func.func @_gram_kernel(%arg0: i32, %arg1: i32, %arg2: memref<8x1024xf32, #tpu.memory_space<vmem>>, %arg3: memref<8x512xf32, #tpu.memory_space<vmem>>, %arg4: memref<1x8x8xf32, #tpu.memory_space<vmem>>, %arg5: memref<1x8x8xf32, #tpu.memory_space<vmem>>) attributes {dimension_semantics = [#tpu.dimension_semantics<parallel>, #tpu.dimension_semantics<arbitrary>], iteration_bounds = array<i64: 1, 1>, scalar_prefetch = 0 : i64, scratch_operands = 0 : i64, tpu.core_type = #tpu.core_type<tc>, window_params = [{pipeline_mode = #tpu.pipeline_mode<synchronous>, transform_indices = @transform_0, window_bounds = array<i64: 8, 1024>}, {pipeline_mode = #tpu.pipeline_mode<synchronous>, transform_indices = @transform_1, window_bounds = array<i64: 8, 512>}, {transform_indices = @transform_2, window_bounds = array<i64: 1, 8, 8>}, {transform_indices = @transform_3, window_bounds = array<i64: 1, 8, 8>}]} {
    %c1_i32 = arith.constant 1 : i32
    %0 = arith.muli %arg0, %c1_i32 : i32
    %1 = arith.addi %0, %arg1 : i32
    %c0_i32 = arith.constant 0 : i32
    %2 = arith.cmpi eq, %arg1, %c0_i32 : i32
    %3 = arith.extui %2 : i1 to i32
    %c0_i32_0 = arith.constant 0 : i32
    %4 = arith.cmpi ne, %3, %c0_i32_0 : i32
    scf.if %4 {
      %cst = arith.constant 0.000000e+00 : f32
      %11 = vector.broadcast %cst : f32 to vector<8x8xf32>
      %c0 = arith.constant 0 : index
      %c0_5 = arith.constant 0 : index
      %c0_6 = arith.constant 0 : index
      %12 = vector.load %arg4[%c0, %c0_5, %c0_6] : memref<1x8x8xf32, #tpu.memory_space<vmem>>, vector<1x8x8xf32>
      %13 = vector.shape_cast %12 : vector<1x8x8xf32> to vector<8x8xf32>
      %14 = vector.shape_cast %11 : vector<8x8xf32> to vector<1x8x8xf32>
      tpu.vector_store %arg4[%c0, %c0_5, %c0_6], %14 {strides = array<i32>} : memref<1x8x8xf32, #tpu.memory_space<vmem>>, vector<1x8x8xf32>,
      %cst_7 = arith.constant 0.000000e+00 : f32
      %15 = vector.broadcast %cst_7 : f32 to vector<8x8xf32>
      %c0_8 = arith.constant 0 : index
      %c0_9 = arith.constant 0 : index
      %c0_10 = arith.constant 0 : index
      %16 = vector.load %arg5[%c0_8, %c0_9, %c0_10] : memref<1x8x8xf32, #tpu.memory_space<vmem>>, vector<1x8x8xf32>
      %17 = vector.shape_cast %16 : vector<1x8x8xf32> to vector<8x8xf32>
      %18 = vector.shape_cast %15 : vector<8x8xf32> to vector<1x8x8xf32>
      tpu.vector_store %arg5[%c0_8, %c0_9, %c0_10], %18 {strides = array<i32>} : memref<1x8x8xf32, #tpu.memory_space<vmem>>, vector<1x8x8xf32>,
    } else {
    }
    %c1_i32_1 = arith.constant 1 : i32
    %5 = arith.cmpi slt, %1, %c1_i32_1 : i32
    %6 = arith.extui %5 : i1 to i32
    %c0_i32_2 = arith.constant 0 : i32
    %7 = arith.cmpi ne, %6, %c0_i32_2 : i32
    scf.if %7 {
      %c0 = arith.constant 0 : index
      %c0_5 = arith.constant 0 : index
      %11 = vector.load %arg2[%c0, %c0_5] : memref<8x1024xf32, #tpu.memory_space<vmem>>, vector<8x1024xf32>
      %c0_6 = arith.constant 0 : index
      %c0_7 = arith.constant 0 : index
      %c0_8 = arith.constant 0 : index
      %12 = vector.load %arg4[%c0_6, %c0_7, %c0_8] : memref<1x8x8xf32, #tpu.memory_space<vmem>>, vector<1x8x8xf32>
      %13 = vector.shape_cast %12 : vector<1x8x8xf32> to vector<8x8xf32>
      %cst = arith.constant dense<0.000000e+00> : vector<8x8xf32>
      %14 = tpu.matmul %11, %11, %cst {dimension_numbers = #tpu.dot_dimension_numbers<[1], [1], [0], [0], [0, 0, 1, 0], [], []>} : vector<8x1024xf32>, vector<8x1024xf32>, vector<8x8xf32> -> vector<8x8xf32>
      %15 = arith.addf %13, %14 : vector<8x8xf32>
      %c0_9 = arith.constant 0 : index
      %c0_10 = arith.constant 0 : index
      %c0_11 = arith.constant 0 : index
      %16 = vector.load %arg4[%c0_9, %c0_10, %c0_11] : memref<1x8x8xf32, #tpu.memory_space<vmem>>, vector<1x8x8xf32>
      %17 = vector.shape_cast %16 : vector<1x8x8xf32> to vector<8x8xf32>
      %18 = vector.shape_cast %15 : vector<8x8xf32> to vector<1x8x8xf32>
      tpu.vector_store %arg4[%c0_9, %c0_10, %c0_11], %18 {strides = array<i32>} : memref<1x8x8xf32, #tpu.memory_space<vmem>>, vector<1x8x8xf32>,
    } else {
    }
    %c1_i32_3 = arith.constant 1 : i32
    %8 = arith.cmpi slt, %1, %c1_i32_3 : i32
    %9 = arith.extui %8 : i1 to i32
    %c0_i32_4 = arith.constant 0 : i32
    %10 = arith.cmpi ne, %9, %c0_i32_4 : i32
    scf.if %10 {
      %c0 = arith.constant 0 : index
      %c0_5 = arith.constant 0 : index
      %11 = vector.load %arg3[%c0, %c0_5] : memref<8x512xf32, #tpu.memory_space<vmem>>, vector<8x512xf32>
      %c0_6 = arith.constant 0 : index
      %c0_7 = arith.constant 0 : index
      %c0_8 = arith.constant 0 : index
      %12 = vector.load %arg5[%c0_6, %c0_7, %c0_8] : memref<1x8x8xf32, #tpu.memory_space<vmem>>, vector<1x8x8xf32>
      %13 = vector.shape_cast %12 : vector<1x8x8xf32> to vector<8x8xf32>
      %cst = arith.constant dense<0.000000e+00> : vector<8x8xf32>
      %14 = tpu.matmul %11, %11, %cst {dimension_numbers = #tpu.dot_dimension_numbers<[1], [1], [0], [0], [0, 0, 1, 0], [], []>} : vector<8x512xf32>, vector<8x512xf32>, vector<8x8xf32> -> vector<8x8xf32>
      %15 = arith.addf %13, %14 : vector<8x8xf32>
      %c0_9 = arith.constant 0 : index
      %c0_10 = arith.constant 0 : index
      %c0_11 = arith.constant 0 : index
      %16 = vector.load %arg5[%c0_9, %c0_10, %c0_11] : memref<1x8x8xf32, #tpu.memory_space<vmem>>, vector<1x8x8xf32>
      %17 = vector.shape_cast %16 : vector<1x8x8xf32> to vector<8x8xf32>
      %18 = vector.shape_cast %15 : vector<8x8xf32> to vector<1x8x8xf32>
      tpu.vector_store %arg5[%c0_9, %c0_10, %c0_11], %18 {strides = array<i32>} : memref<1x8x8xf32, #tpu.memory_space<vmem>>, vector<1x8x8xf32>,
    } else {
    }
    return
  }
  func.func @transform_0(%arg0: i32, %arg1: i32) -> (i32, i32) {
    %c0_i32 = arith.constant 0 : i32
    %c0_i32_0 = arith.constant 0 : i32
    %c0_i32_1 = arith.constant 0 : i32
    return %c0_i32, %c0_i32_0 : i32, i32
  }
  func.func @transform_1(%arg0: i32, %arg1: i32) -> (i32, i32) {
    %c0_i32 = arith.constant 0 : i32
    %c0_i32_0 = arith.constant 0 : i32
    %c0_i32_1 = arith.constant 0 : i32
    return %c0_i32, %c0_i32_0 : i32, i32
  }
  func.func @transform_2(%arg0: i32, %arg1: i32) -> (i32, i32, i32) {
    %c0_i32 = arith.constant 0 : i32
    %c0_i32_0 = arith.constant 0 : i32
    %c0_i32_1 = arith.constant 0 : i32
    return %arg0, %c0_i32, %c0_i32_0 : i32, i32, i32
  }
  func.func @transform_3(%arg0: i32, %arg1: i32) -> (i32, i32, i32) {
    %c0_i32 = arith.constant 0 : i32
    %c0_i32_0 = arith.constant 0 : i32
    %c0_i32_1 = arith.constant 0 : i32
    return %arg0, %c0_i32, %c0_i32_0 : i32, i32, i32
  }
}

</mosaic_0001>

<bundles_post_ra>
// kernel: tpu_custom_call.1
= control target key start
LH: loop header
LB: loop body
LE: loop exit
PB: predicated region body
PF: predicated region fallthrough
CT: control target
= control target key end

     0   :  { %9 = vsyncpa [#allocation3], 0  ;;  %s698_s0 = inlined_call_operand.hbm [shape: f32[8,1024], index: 0, kind: input, shape index: {}]   ;;  %s699_s1 = inlined_call_operand.hbm [shape: f32[8,512], index: 1, kind: input, shape index: {}]   ;;  %s700_s2 = inlined_call_operand.hbm [shape: f32[1,8,8], index: 2, kind: output, shape index: {0}]   ;;  %s701_s3 = inlined_call_operand.hbm [shape: f32[1,8,8], index: 3, kind: output, shape index: {1}]  }
   0x1   :  { %10 = vsyncpa [#allocation6], 0 }
   0x2   :  { %11 = vsyncpa [#allocation4], 0 }
   0x3   :  { %12 = vsyncpa [#allocation9], 0  ;;  %s621_s12 = smov [#allocation2]   ;;  %s622_s14 = smov [#allocation5]  }
   0x4   :  { %s19_s13 = sshll.u32 %s621_s12, 4  ;;  %s29_s15 = sshll.u32 %s622_s14, 4  ;;  %s20_s13 = int_to_ptr.vmem [resolvable:$true] %s19_s13  ;;  %s30_s15 = int_to_ptr.vmem [resolvable:$true] %s29_s15 }
   0x5   :  { %s525_s18 = scalar_lea.hbm %s698_s0, 1024 }
   0x6   :  { %p526_p0 = scmp.ne.s32.totalorder %s698_s0, %s525_s18  ;;  %p529_p1 = scmp.lt.u32.totalorder %s525_s18, %s698_s0 }
   0x8   :  { %p531_p2 = pnand %p529_p1, %p526_p0 }
   0xa   :  { %534 = shalt.err (!%p531_p2)
}
   0xb   :  { %s535_s23 = scalar_lea.vmem %s20_s13, 1024  ;;  %p540_p4 = scmp.lt.s32.totalorder %s20_s13, %s20_s13 }
   0xc   :  { %p536_p3 = scmp.ne.s32.totalorder %s20_s13, %s535_s23  ;;  %p541_p5 = scmp.lt.s32.totalorder %s535_s23, %s535_s23 }
   0xe   :  { %p542_p6 = por %p541_p5, %p540_p4 }
  0x10   :  { %p543_p7 = pnand %p542_p6, %p536_p3 }
  0x12   :  { %546 = shalt.err (!%p543_p7)
}
  0x13   :  { %22 = dma.hbm_to_vmem [thread:$0]  %s698_s0, 1024, %s20_s13, [#allocation3]  }
  0x14   :  { %s547_s28 = scalar_lea.hbm %s699_s1, 512 }
  0x15   :  { %p548_p8 = scmp.ne.s32.totalorder %s699_s1, %s547_s28  ;;  %p551_p9 = scmp.lt.u32.totalorder %s547_s28, %s699_s1 }
  0x17   :  { %p553_p10 = pnand %p551_p9, %p548_p8 }
  0x19   :  { %556 = shalt.err (!%p553_p10)
}
  0x1a   :  { %s557_s6 = scalar_lea.vmem %s30_s15, 512  ;;  %p562_p12 = scmp.lt.s32.totalorder %s30_s15, %s30_s15 }
  0x1b   :  { %p558_p11 = scmp.ne.s32.totalorder %s30_s15, %s557_s6  ;;  %p563_p13 = scmp.lt.s32.totalorder %s557_s6, %s557_s6 }
  0x1d   :  { %p564_p0 = por %p563_p13, %p562_p12 }
  0x1f   :  { %p565_p1 = pnand %p564_p0, %p558_p11 }
  0x21   :  { %568 = shalt.err (!%p565_p1)
}
  0x22   :  { %32 = dma.hbm_to_vmem [thread:$0]  %s699_s1, 512, %s30_s15, [#allocation6]  }
  0x23   :  { %613 = dma.done.wait [#allocation3], 1024  }
  0x24   :  { %614 = vsyncadd [#allocation3], 4294966272 }
  0x25   :  { %615 = dma.done.wait [#allocation6], 512  }
  0x26   :  { %616 = vsyncadd [#allocation6], 4294966784  ;;  %v52_v0 = vld [vmem:[#allocation2 + $0x8] sm:$0xff]  ;;  %v54_v1 = vld [vmem:[#allocation2 + $0x18] sm:$0xff]  ;;  %vm44_vm0 = vcmask 64512   ;;  %v623_v12 = vmov 0.0  }
  0x27   :  { %v51_v2 = vld [vmem:[#allocation2] sm:$0xff]  ;;  %60 = vmatprep.subr.mxu0 %v52_v0  ;;  %130 = vmatprep.subr.mxu1 %v54_v1  ;;  %v53_v3 = vld [vmem:[#allocation2 + $0x10] sm:$0xff]  ;;  %v56_v4 = vld [vmem:[#allocation2 + $0x28] sm:$0xff]  ;;  %45 = vst.msk [vmem:[#allocation7] sm:$0xff] %vm44_vm0, %v623_v12  ;;  %s624_s1 = smov [#allocation7]   ;;  %s625_s9 = smov [#allocation8]  }
  0x28   :  { %v58_v5 = vld [vmem:[#allocation2 + $0x38] sm:$0xff]  ;;  %61 = vmatpush1.xpose.msra.mxu0 %v51_v2  ;;  %131 = vmatpush1.xpose.msra.mxu1 %v53_v3  ;;  %v55_v6 = vld [vmem:[#allocation2 + $0x20] sm:$0xff]  ;;  %v57_v7 = vld [vmem:[#allocation2 + $0x30] sm:$0xff]  ;;  %46 = vst.msk [vmem:[#allocation8] sm:$0xff] %vm44_vm0, %v623_v12  ;;  %s496_s8 = sshll.u32 %s624_s1, 4  ;;  %s506_s10 = sshll.u32 %s625_s9, 4  ;;  %s497_s8 = int_to_ptr.vmem [resolvable:$true] %s496_s8  ;;  %s507_s10 = int_to_ptr.vmem [resolvable:$true] %s506_s10 }
  0x29   :  { %124 = vmatprep.mubr.f32.mxu0 %v52_v0  ;;  %194 = vmatprep.mubr.f32.mxu1 %v54_v1  ;;  %v344_v8 = vld [vmem:[#allocation5 + $0x8] sm:$0xff]  ;;  %v346_v9 = vld [vmem:[#allocation5 + $0x18] sm:$0xff]  ;;  %v343_v10 = vld [vmem:[#allocation5] sm:$0xff]  ;;  %s569_s11 = scalar_lea.vmem %s497_s8, 128  ;;  %p574_p3 = scmp.lt.s32.totalorder %s497_s8, %s497_s8 }
  0x2a   :  { %200 = vmatprep.subr.mxu0 %v56_v4  ;;  %270 = vmatprep.subr.mxu1 %v58_v5  ;;  %v345_v11 = vld [vmem:[#allocation5 + $0x10] sm:$0xff]  ;;  %p570_p2 = scmp.ne.s32.totalorder %s497_s8, %s569_s11  ;;  %p575_p4 = scmp.lt.s32.totalorder %s569_s11, %s569_s11 }
  0x2b   :  { %125 = vmatmul.mubr.f32.vlgmr.msra.gmra.mrb[0].mxu0 %v51_v2  ;;  %195 = vmatmul.mubr.f32.vlgmr.msra.gmra.mrb[0].mxu1 %v53_v3 }
  0x2c   :  { %201 = vmatpush1.xpose.msra.mxu0 %v55_v6  ;;  %271 = vmatpush1.xpose.msra.mxu1 %v57_v7  ;;  %p576_p5 = por %p575_p4, %p574_p3 }
  0x2d   :  { %264 = vmatprep.mubr.f32.mxu0 %v56_v4  ;;  %334 = vmatprep.mubr.f32.mxu1 %v58_v5 }
  0x2e   :  { %348 = vmatprep.subr.mxu0 %v344_v8  ;;  %418 = vmatprep.subr.mxu1 %v346_v9  ;;  %v59_v23 = vld [vmem:[#allocation7] sm:$0xff]  ;;  %p577_p6 = pnand %p576_p5, %p570_p2 }
  0x2f   :  { %265 = vmatmul.mubr.f32.vlgmr.msra.gmra.mrb[2].mxu0 %v55_v6  ;;  %335 = vmatmul.mubr.f32.vlgmr.msra.gmra.mrb[2].mxu1 %v57_v7  ;;  %v347_v26 = vld [vmem:[#allocation8] sm:$0xff] }
  0x30   :  { %349 = vmatpush1.xpose.msra.mxu0 %v343_v10  ;;  %419 = vmatpush1.xpose.msra.mxu1 %v345_v11 }
  0x31   :  { %412 = vmatprep.mubr.f32.mxu0 %v344_v8  ;;  %482 = vmatprep.mubr.f32.mxu1 %v346_v9 }
  0x33   :  { %413 = vmatmul.mubr.f32.vlgmr.msra.gmra.mrb[4].mxu0 %v343_v10  ;;  %483 = vmatmul.mubr.f32.vlgmr.msra.gmra.mrb[4].mxu1 %v345_v11 }
  0xfe   :  { %v126_v13 = vpop.f32.mrb[0].mxu0  ;;  %v196_v14 = vpop.f32.mrb[0].mxu1 }
  0xff   :  { %v197_v15 = vadd.f32 %v196_v14, %v126_v13  ;;  %v128_v16 = vpop.f32.mrb[1].mxu0  ;;  %v198_v17 = vpop.f32.mrb[1].mxu1 }
 0x102   :  { %v266_v18 = vpop.f32.mrb[2].mxu0  ;;  %v336_v19 = vpop.f32.mrb[2].mxu1 }
 0x103   :  { %v267_v20 = vadd.f32 %v266_v18, %v197_v15  ;;  %v268_v21 = vpop.f32.mrb[3].mxu0  ;;  %v338_v22 = vpop.f32.mrb[3].mxu1 }
 0x105   :  { %v337_v24 = vadd.f32 %v336_v19, %v267_v20 }
 0x106   :  { %v414_v25 = vpop.f32.mrb[4].mxu0  ;;  %v484_v27 = vpop.f32.mrb[4].mxu1 }
 0x107   :  { %v340_v28 = vadd.f32 %v337_v24, %v59_v23  ;;  %v485_v29 = vadd.f32 %v484_v27, %v414_v25  ;;  %v416_v30 = vpop.f32.mrb[5].mxu0  ;;  %v486_v31 = vpop.f32.mrb[5].mxu1 }
 0x109   :  { %342 = vst.msk [vmem:[#allocation7] sm:$0xff] %vm44_vm0, %v340_v28  ;;  %v488_v32 = vadd.f32 %v485_v29, %v347_v26 }
 0x10a   :  { %580 = shalt.err (!%p577_p6)
}
 0x10b   :  { %s581_s14 = scalar_lea.hbm %s700_s2, 128 }
 0x10c   :  { %p582_p7 = scmp.ne.s32.totalorder %s700_s2, %s581_s14  ;;  %p585_p8 = scmp.lt.u32.totalorder %s581_s14, %s700_s2 }
 0x10e   :  { %p587_p9 = pnand %p585_p8, %p582_p7 }
 0x110   :  { %590 = shalt.err (!%p587_p9)
}
 0x111   :  { %499 = dma.vmem_to_hbm [thread:$0]  %s497_s8, 128, %s700_s2, [#allocation4]   ;;  %489 = vst.msk [vmem:[#allocation8] sm:$0xff] %vm44_vm0, %v488_v32 }
 0x112   :  { %s591_s21 = scalar_lea.vmem %s507_s10, 128  ;;  %p596_p11 = scmp.lt.s32.totalorder %s507_s10, %s507_s10 }
 0x113   :  { %p592_p10 = scmp.ne.s32.totalorder %s507_s10, %s591_s21  ;;  %p597_p12 = scmp.lt.s32.totalorder %s591_s21, %s591_s21 }
 0x115   :  { %p598_p13 = por %p597_p12, %p596_p11 }
 0x117   :  { %p599_p0 = pnand %p598_p13, %p592_p10 }
 0x119   :  { %602 = shalt.err (!%p599_p0)
}
 0x11a   :  { %s603_s24 = scalar_lea.hbm %s701_s3, 128 }
 0x11b   :  { %p604_p1 = scmp.ne.s32.totalorder %s701_s3, %s603_s24  ;;  %p607_p2 = scmp.lt.u32.totalorder %s603_s24, %s701_s3 }
 0x11d   :  { %p609_p3 = pnand %p607_p2, %p604_p1 }
 0x11f   :  { %612 = shalt.err (!%p609_p3)
}
 0x120   :  { %509 = dma.vmem_to_hbm [thread:$0]  %s507_s10, 128, %s701_s3, [#allocation9]  }
 0x121   :  { %617 = dma.done.wait [#allocation4], 128  }
 0x122   :  { %618 = vsyncadd [#allocation4], 4294967168 }
 0x123   :  { %619 = dma.done.wait [#allocation9], 128  }
 0x124   :  { %620 = vsyncadd [#allocation9], 4294967168 }
 0x125   :  { %516 = vsyncpa [#allocation3], 1 }
 0x126   :  { %517 = vsyncpa [#allocation6], 1 }
 0x127   :  { %518 = vsyncpa [#allocation4], 1 }
 0x128   :  { %519 = vsyncpa [#allocation9], 1 }

</bundles_post_ra>
